<compile_context>
chip_gen: v7x
topology: tpu7x:2x2x1
jax: 0.10.0
libtpu: 0.0.40
codegen_flags: <defaults>
</compile_context>

<pallas_src>
import functools

import jax
import jax.numpy as jnp
from jax import lax
from jax.experimental import pallas as pl
from jax.experimental.pallas import tpu as pltpu


def _focal_loss_kernel(logits_ref, side_ref, out_ref, acc_ref, *,
                       gamma, total_b, tile_b, blocks_per_split, has_alpha):
    # logits_ref: (tile_b, C) native dtype in VMEM
    # side_ref:   (tile_b, k) f32 in VMEM; col 0 = target id, col 1 = alpha[target]
    # out_ref:    (8, 128) f32 VMEM block — this split's partial sum (broadcast)
    # acc_ref:    (1,) f32 SMEM scratch accumulator (per core / per split)
    s = pl.program_id(0)          # batch split (parallel axis)
    i = pl.program_id(1)          # block within split (reduction axis)

    @pl.when(i == 0)
    def _():
        acc_ref[0] = jnp.float32(0.0)

    x = logits_ref[...]                                   # (tb, C) native dtype
    tb, c = x.shape

    # Row max in the native dtype (any value near the max stabilizes exp; it
    # cancels exactly below), then a single fused upcast+shift f32 tile.
    m = jnp.max(x, axis=-1, keepdims=True)                # (tb, 1) native
    shifted = x.astype(jnp.float32) - m.astype(jnp.float32)   # (tb, C) f32
    e = jnp.exp(shifted)
    sumexp = jnp.sum(e, axis=-1, keepdims=True)           # (tb, 1)

    # Gather logits[b, targets[b]] - m via one-hot mask on the shifted tile
    # (reuses `shifted`; no extra pass over the raw logits).
    targets = side_ref[:, 0:1].astype(jnp.int32)          # (tb, 1)
    class_ids = lax.broadcasted_iota(jnp.int32, (tb, c), 1)
    onehot = class_ids == targets
    tgt_shift = jnp.sum(jnp.where(onehot, shifted, 0.0), axis=-1, keepdims=True)

    # ce = logsumexp(x) - x_t  (the shift m cancels exactly).
    ce = jnp.log(sumexp) - tgt_shift                       # (tb, 1) f32
    if has_alpha:
        # F.cross_entropy(reduction='none', weight=alpha) scales each sample's
        # NLL by alpha[target]; gathered in the wrapper.
        ce = ce * side_ref[:, 1:2]

    # Focal modulation; clamp (1 - pt) at 0 to avoid NaN from power of a tiny
    # negative when ce rounds slightly below 0.
    pt = jnp.exp(-ce)
    one_minus_pt = jnp.maximum(1.0 - pt, 0.0)
    g = float(gamma)
    if g == 0.0:
        focal = ce
    elif g.is_integer() and 0.0 < g <= 4.0:
        mod = one_minus_pt
        for _ in range(int(g) - 1):
            mod = mod * one_minus_pt
        focal = mod * ce
    else:
        focal = jnp.power(one_minus_pt, g) * ce

    # Mask ragged-tail rows and fully-out-of-range (clamped) blocks of the last
    # split: valid iff the *virtual* global row index is < B.
    row_id = lax.broadcasted_iota(jnp.int32, (tb, 1), 0)
    virt_block = s * blocks_per_split + i
    valid = (virt_block * tile_b + row_id) < total_b
    acc_ref[0] += jnp.sum(jnp.where(valid, focal, 0.0))

    @pl.when(i == pl.num_programs(1) - 1)
    def _():
        out_ref[...] = jnp.full(out_ref.shape, acc_ref[0], dtype=jnp.float32)


def focal_loss(logits, targets, *, gamma=2.0, alpha=None, reduction="mean",
               max_tile_b=None):
    """Pallas TPU focal loss. logits: (B, C) float (any dtype), targets: (B,) int."""
    b, c = logits.shape

    if reduction not in ("mean", "sum"):
        # TODO(synk): reduction='none' (per-sample vector output) not wired
        # through this scalar-reduction kernel; only 'mean'/'sum' supported.
        raise NotImplementedError("only 'mean' and 'sum' reductions implemented")
    assert c < (1 << 24), "targets packed as f32 are exact only below 2**24 classes"

    has_alpha = alpha is not None
    tgt_i = targets.astype(jnp.int32)
    side_cols = [tgt_i.astype(jnp.float32)]
    if has_alpha:
        alpha_arr = jnp.asarray(alpha, jnp.float32).reshape(c)
        # Tiny (B,) gather hoisted out of the kernel: avoids a second O(B*C)
        # masked reduce per tile.
        side_cols.append(alpha_arr[tgt_i])
    side = jnp.stack(side_cols, axis=-1)          # (B, 1 or 2) f32
    ncol = side.shape[1]

    itemsize = jnp.dtype(logits.dtype).itemsize
    sub = 16 if itemsize == 2 else 8              # sublane packing
    c_pad = pl.cdiv(c, 128) * 128                 # lane-padded class width in VMEM

    # Generation-aware VMEM budget: ~3/4 of physical VMEM as the scoped limit
    # (96 MiB on v5e/v6e's 128 MiB, 48 MiB on v7x's 64 MiB).
    try:
        vmem_cap = int(pltpu.get_tpu_info().vmem_capacity_bytes)
    except Exception:
        vmem_cap = 64 * 1024 * 1024               # conservative fallback (v7x)
    vmem_limit = max(32 * 1024 * 1024, (vmem_cap * 3) // 4)

    # Per-row VMEM model (padding-aware): double-buffered logits block +
    # double-buffered side block (pads to 128 lanes) + ~4 full-width f32
    # temporaries (shifted, exp, iota, select) + ~8 width-1 f32 per-row
    # temporaries that also pad to 128 lanes.
    per_row = (2 * c_pad * itemsize) + (2 * 128 * 4) \
            + (4 * c_pad * 4) + (8 * 128 * 4) + 32
    budget = vmem_limit - 4 * 1024 * 1024
    max_rows = max(sub, (budget // per_row) // sub * sub)
    if max_tile_b is not None:
        max_rows = min(max_rows, max(sub, (int(max_tile_b) // sub) * sub))
    # TODO(synk): for vocab-sized C where even `sub` rows exceed VMEM, add a
    # second 'arbitrary' class-tile axis with an online (flash-style) logsumexp.

    # tile_b == b (full dim) is always layout-legal; otherwise tile_b is a
    # multiple of the sublane packing and the ragged tail is masked in-kernel.
    tile_b = b if b <= max_rows else max_rows
    nblocks = pl.cdiv(b, tile_b)

    # Two-way batch split on a leading parallel axis: uses both TensorCores on
    # v7x; on 1-TC chips the two splits just run back-to-back (negligible cost).
    nsplit = 2 if nblocks >= 2 else 1
    bps = pl.cdiv(nblocks, nsplit)                # blocks per split
    grid = (nsplit, bps)

    def data_map(s, i):
        # Clamp so the last split's padded steps re-read a valid block; their
        # rows are fully masked inside the kernel via the virtual block index.
        return (jnp.minimum(s * bps + i, nblocks - 1), 0)

    kernel = functools.partial(
        _focal_loss_kernel, gamma=float(gamma), total_b=b, tile_b=tile_b,
        blocks_per_split=bps, has_alpha=has_alpha)

    partials = pl.pallas_call(
        kernel,
        out_shape=jax.ShapeDtypeStruct((nsplit * 8, 128), jnp.float32),
        grid_spec=pltpu.PrefetchScalarGridSpec(
            num_scalar_prefetch=0,
            grid=grid,
            in_specs=[
                pl.BlockSpec((tile_b, c), data_map),
                pl.BlockSpec((tile_b, ncol), data_map),
            ],
            out_specs=pl.BlockSpec((8, 128), lambda s, i: (s, 0)),
            scratch_shapes=[pltpu.SMEM((1,), jnp.float32)],
        ),
        compiler_params=pltpu.CompilerParams(
            dimension_semantics=("parallel", "arbitrary"),
            vmem_limit_bytes=int(vmem_limit),
        ),
    )(logits, side)

    total = jnp.sum(partials.reshape(nsplit, 8, 128)[:, 0, 0])
    if reduction == "mean":
        # Matches the PyTorch module: reduction='none' CE then .mean() — i.e.
        # divide by B even when alpha is present.
        total = total / jnp.float32(b)
    return total


def _focal_loss_ref(logits, targets, *, gamma=2.0, alpha=None, reduction="mean"):
    """Pure-JAX reference mirroring the PyTorch module."""
    logits = logits.astype(jnp.float32)
    lse = jax.nn.logsumexp(logits, axis=-1)
    tgt_logit = jnp.take_along_axis(
        logits, targets[:, None].astype(jnp.int32), axis=-1)[:, 0]
    ce = lse - tgt_logit
    if alpha is not None:
        ce = ce * jnp.asarray(alpha, jnp.float32)[targets]
    pt = jnp.exp(-ce)
    focal = jnp.maximum(1.0 - pt, 0.0) ** gamma * ce
    return focal.mean() if reduction == "mean" else focal.sum()


if __name__ == "__main__":
    key = jax.random.PRNGKey(0)
    k_logits, k_targets, k_alpha = jax.random.split(key, 3)

    # Case 1: f32, mean reduction (module defaults).
    B, C = 8, 32
    logits = jax.random.normal(k_logits, (B, C), dtype=jnp.float32) * 2.0
    targets = jax.random.randint(k_targets, (B,), 0, C, dtype=jnp.int32)

    out = jax.block_until_ready(focal_loss(logits, targets, gamma=2.0))
    ref = _focal_loss_ref(logits, targets, gamma=2.0)
    assert jnp.allclose(out, ref, rtol=1e-5, atol=1e-5), (out, ref)

    # Case 2: alpha class weights + sum reduction.
    alpha = jax.random.uniform(k_alpha, (C,), jnp.float32, 0.5, 1.5)
    out = jax.block_until_ready(
        focal_loss(logits, targets, gamma=2.0, alpha=alpha, reduction="sum"))
    ref = _focal_loss_ref(logits, targets, gamma=2.0, alpha=alpha, reduction="sum")
    assert jnp.allclose(out, ref, rtol=1e-5, atol=1e-5), (out, ref)

    # Case 3: bf16 logits, ragged batch + two-way core split (B=20, 16-row tile
    # -> 2 blocks, nsplit=2, tail rows masked).
    B2 = 20
    logits_bf16 = (jax.random.normal(k_logits, (B2, C), dtype=jnp.float32) * 2.0
                   ).astype(jnp.bfloat16)
    targets2 = jax.random.randint(k_targets, (B2,), 0, C, dtype=jnp.int32)
    out = jax.block_until_ready(
        focal_loss(logits_bf16, targets2, gamma=2.0, max_tile_b=16))
    ref = _focal_loss_ref(logits_bf16.astype(jnp.float32), targets2, gamma=2.0)
    assert jnp.allclose(out, ref, rtol=2e-2, atol=2e-2), (out, ref)

    # Case 4: odd block count + fractional gamma (exercises the clamped index
    # map, the fully-masked padded step of split 1, and the jnp.power path).
    B3 = 40
    logits3 = jax.random.normal(k_logits, (B3, C), dtype=jnp.float32) * 2.0
    targets3 = jax.random.randint(k_targets, (B3,), 0, C, dtype=jnp.int32)
    out = jax.block_until_ready(
        focal_loss(logits3, targets3, gamma=2.5, alpha=alpha, max_tile_b=16))
    ref = _focal_loss_ref(logits3, targets3, gamma=2.5, alpha=alpha)
    assert jnp.allclose(out, ref, rtol=1e-5, atol=1e-5), (out, ref)

    print("KERNEL_OK")
</pallas_src>

<mosaic_0001>
module attributes {stable_mosaic.version = 11 : i64} {
  func.func @_focal_loss_kernel(%arg0: i32, %arg1: i32, %arg2: memref<8x32xf32, #tpu.memory_space<vmem>>, %arg3: memref<8x1xf32, #tpu.memory_space<vmem>>, %arg4: memref<8x128xf32, #tpu.memory_space<vmem>>, %arg5: memref<1xf32, #tpu.memory_space<smem>>) attributes {dimension_semantics = [#tpu.dimension_semantics<parallel>, #tpu.dimension_semantics<arbitrary>], iteration_bounds = array<i64: 1, 1>, scalar_prefetch = 0 : i64, scratch_operands = 1 : i64, tpu.core_type = #tpu.core_type<tc>, window_params = [{transform_indices = @transform_0, window_bounds = array<i64: 8, 32>}, {transform_indices = @transform_1, window_bounds = array<i64: 8, 1>}, {transform_indices = @transform_2, window_bounds = array<i64: 8, 128>}]} {
    %c0_i32 = arith.constant 0 : i32
    %0 = arith.cmpi eq, %arg1, %c0_i32 : i32
    %1 = arith.extui %0 : i1 to i32
    %c0_i32_0 = arith.constant 0 : i32
    %2 = arith.cmpi ne, %1, %c0_i32_0 : i32
    scf.if %2 {
      %cst_17 = arith.constant 0.000000e+00 : f32
      %c0_18 = arith.constant 0 : index
      %51 = memref.load %arg5[%c0_18] : memref<1xf32, #tpu.memory_space<smem>>
      memref.store %cst_17, %arg5[%c0_18] : memref<1xf32, #tpu.memory_space<smem>>
    } else {
    }
    %c0 = arith.constant 0 : index
    %c0_1 = arith.constant 0 : index
    %3 = vector.load %arg2[%c0, %c0_1] : memref<8x32xf32, #tpu.memory_space<vmem>>, vector<8x32xf32>
    %cst = arith.constant dense<0xFF800000> : vector<8xf32>
    %4 = vector.multi_reduction <maximumf>, %3, %cst [1] : vector<8x32xf32> to vector<8xf32>
    %5 = vector.shape_cast %4 : vector<8xf32> to vector<8x1xf32>
    %6 = vector.broadcast %5 : vector<8x1xf32> to vector<8x32xf32>
    %7 = arith.subf %3, %6 : vector<8x32xf32>
    %8 = math.exp %7 : vector<8x32xf32>
    %cst_2 = arith.constant dense<0.000000e+00> : vector<8xf32>
    %9 = vector.multi_reduction <add>, %8, %cst_2 [1] : vector<8x32xf32> to vector<8xf32>
    %10 = vector.shape_cast %9 : vector<8xf32> to vector<8x1xf32>
    %c0_3 = arith.constant 0 : index
    %c0_4 = arith.constant 0 : index
    %11 = vector.load %arg3[%c0_3, %c0_4] : memref<8x1xf32, #tpu.memory_space<vmem>>, vector<8x1xf32>
    %12 = arith.fptosi %11 : vector<8x1xf32> to vector<8x1xi32>
    %13 = tpu.iota {dimensions = array<i32: 1>} : vector<8x32xi32>
    %14 = vector.broadcast %12 : vector<8x1xi32> to vector<8x32xi32>
    %15 = arith.cmpi eq, %13, %14 : vector<8x32xi32>
    %cst_5 = arith.constant 0.000000e+00 : f32
    %16 = vector.broadcast %cst_5 : f32 to vector<8x32xf32>
    %17 = arith.select %15, %7, %16 : vector<8x32xi1>, vector<8x32xf32>
    %cst_6 = arith.constant dense<0.000000e+00> : vector<8xf32>
    %18 = vector.multi_reduction <add>, %17, %cst_6 [1] : vector<8x32xf32> to vector<8xf32>
    %19 = vector.shape_cast %18 : vector<8xf32> to vector<8x1xf32>
    %20 = math.log %10 : vector<8x1xf32>
    %21 = arith.subf %20, %19 : vector<8x1xf32>
    %cst_7 = arith.constant 0.000000e+00 : f32
    %22 = vector.broadcast %cst_7 : f32 to vector<8x1xf32>
    %23 = arith.subf %22, %21 : vector<8x1xf32>
    %24 = math.exp %23 : vector<8x1xf32>
    %cst_8 = arith.constant 1.000000e+00 : f32
    %25 = vector.broadcast %cst_8 : f32 to vector<8x1xf32>
    %26 = arith.subf %25, %24 : vector<8x1xf32>
    %cst_9 = arith.constant 0.000000e+00 : f32
    %27 = vector.broadcast %cst_9 : f32 to vector<8x1xf32>
    %28 = arith.maximumf %26, %27 : vector<8x1xf32>
    %29 = arith.mulf %28, %28 : vector<8x1xf32>
    %30 = arith.mulf %29, %21 : vector<8x1xf32>
    %31 = tpu.iota {dimensions = array<i32: 0>} : vector<8x1xi32>
    %c1_i32 = arith.constant 1 : i32
    %32 = arith.muli %arg0, %c1_i32 : i32
    %33 = arith.addi %32, %arg1 : i32
    %c8_i32 = arith.constant 8 : i32
    %34 = arith.muli %33, %c8_i32 : i32
    %35 = vector.broadcast %34 : i32 to vector<8x1xi32>
    %36 = arith.addi %35, %31 : vector<8x1xi32>
    %c8_i32_10 = arith.constant 8 : i32
    %37 = vector.broadcast %c8_i32_10 : i32 to vector<8x1xi32>
    %38 = arith.cmpi slt, %36, %37 : vector<8x1xi32>
    %c0_11 = arith.constant 0 : index
    %39 = memref.load %arg5[%c0_11] : memref<1xf32, #tpu.memory_space<smem>>
    %cst_12 = arith.constant 0.000000e+00 : f32
    %40 = vector.broadcast %cst_12 : f32 to vector<8x1xf32>
    %41 = arith.select %38, %30, %40 : vector<8x1xi1>, vector<8x1xf32>
    %42 = vector.shape_cast %41 : vector<8x1xf32> to vector<1x8x1xf32>
    %cst_13 = arith.constant dense<0.000000e+00> : vector<1xf32>
    %43 = vector.multi_reduction <add>, %42, %cst_13 [1, 2] : vector<1x8x1xf32> to vector<1xf32>
    %44 = vector.shape_cast %43 : vector<1xf32> to vector<1x1x1xf32>
    %45 = vector.extract %44[0, 0, 0] : f32 from vector<1x1x1xf32>
    %46 = arith.addf %39, %45 : f32
    %c0_14 = arith.constant 0 : index
    %47 = memref.load %arg5[%c0_14] : memref<1xf32, #tpu.memory_space<smem>>
    memref.store %46, %arg5[%c0_14] : memref<1xf32, #tpu.memory_space<smem>>
    %c0_i32_15 = arith.constant 0 : i32
    %48 = arith.cmpi eq, %arg1, %c0_i32_15 : i32
    %49 = arith.extui %48 : i1 to i32
    %c0_i32_16 = arith.constant 0 : i32
    %50 = arith.cmpi ne, %49, %c0_i32_16 : i32
    scf.if %50 {
      %c0_17 = arith.constant 0 : index
      %51 = memref.load %arg5[%c0_17] : memref<1xf32, #tpu.memory_space<smem>>
      %52 = vector.broadcast %51 : f32 to vector<8x128xf32>
      %c0_18 = arith.constant 0 : index
      %c0_19 = arith.constant 0 : index
      %53 = vector.load %arg4[%c0_18, %c0_19] : memref<8x128xf32, #tpu.memory_space<vmem>>, vector<8x128xf32>
      tpu.vector_store %arg4[%c0_18, %c0_19], %52 {strides = array<i32>} : memref<8x128xf32, #tpu.memory_space<vmem>>, vector<8x128xf32>,
    } else {
    }
    return
  }
  func.func @transform_0(%arg0: i32, %arg1: i32) -> (i32, i32) {
    %c1_i32 = arith.constant 1 : i32
    %0 = arith.muli %arg0, %c1_i32 : i32
    %1 = arith.addi %0, %arg1 : i32
    %c0_i32 = arith.constant 0 : i32
    %2 = arith.minsi %1, %c0_i32 : i32
    %c0_i32_0 = arith.constant 0 : i32
    %c0_i32_1 = arith.constant 0 : i32
    return %2, %c0_i32_0 : i32, i32
  }
  func.func @transform_1(%arg0: i32, %arg1: i32) -> (i32, i32) {
    %c1_i32 = arith.constant 1 : i32
    %0 = arith.muli %arg0, %c1_i32 : i32
    %1 = arith.addi %0, %arg1 : i32
    %c0_i32 = arith.constant 0 : i32
    %2 = arith.minsi %1, %c0_i32 : i32
    %c0_i32_0 = arith.constant 0 : i32
    %c0_i32_1 = arith.constant 0 : i32
    return %2, %c0_i32_0 : i32, i32
  }
  func.func @transform_2(%arg0: i32, %arg1: i32) -> (i32, i32) {
    %c0_i32 = arith.constant 0 : i32
    %c0_i32_0 = arith.constant 0 : i32
    return %arg0, %c0_i32 : i32, i32
  }
}

</mosaic_0001>

<bundles_post_ra>
// kernel: tpu_custom_call.1
= control target key start
LH: loop header
LB: loop body
LE: loop exit
PB: predicated region body
PF: predicated region fallthrough
CT: control target
= control target key end

     0   :  { %vm73_vm0 = vcmask 261120   ;;  %s235_s0 = inlined_call_operand.vmem [shape: f32[8,32], index: 0, kind: input, shape index: {}]   ;;  %s236_s1 = inlined_call_operand.vmem [shape: f32[8,1], index: 1, kind: input, shape index: {}]   ;;  %s237_s2 = inlined_call_operand.hbm [shape: f32[8,128], index: 2, kind: output, shape index: {}]  }
   0x1   :  { %v72_v0 = vld [vmem:[%s235_s0] sm:$0xff] }
   0x2   :  { %7 = vsyncpa [#allocation4], 0  ;;  %v74_v1 = vsel %vm73_vm0, %v72_v0, -inf  ;;  %v197_v2 = vmov 0   ;;  %v83_v3 = vld [vmem:[%s236_s1] sm:$0xff]  ;;  %v85_v9 = vlaneseq  ;;  %vm114_vm2 = vcmask 7168  }
   0x3   :  { %166 = vset.pattern.permute.xlu0 %v197_v2  ;;  %v160_v4 = vtrunc.f32 %v83_v3  ;;  %s198_s0 = smov [#allocation3]  }
   0x4   :  { %75 = vmax.xlane.f32.xlu0 %v74_v1  ;;  %v86_v10 = vand.u32 127, %v85_v9  ;;  %s140_s1 = sshll.u32 %s198_s0, 4  ;;  %s141_s1 = int_to_ptr.vmem [resolvable:$true] %s140_s1 }
   0x5   :  { %v161_v5 = vcvt.f32.s32 %v160_v4  ;;  %s173_s14 = scalar_lea.vmem %s141_s1, 128  ;;  %p178_p1 = scmp.lt.s32.totalorder %s141_s1, %s141_s1 }
   0x6   :  { %p174_p0 = scmp.ne.s32.totalorder %s141_s1, %s173_s14  ;;  %p179_p2 = scmp.lt.s32.totalorder %s173_s14, %s173_s14 }
   0x8   :  { %p180_p3 = por %p179_p2, %p178_p1 }
   0xa   :  { %p181_p4 = pnand %p180_p3, %p174_p0 }
  0x1a   :  { %88 = vperm.xlu0 %166, %v161_v5  }
  0x91   :  { %v76_v6 = vpop.xlane.xlu0 %75 }
  0x92   :  { %v77_v7 = vsub.f32 %v72_v0, %v76_v6 }
  0x94   :  { %v78_v8 = vmul.f32 1.442695, %v77_v7 }
  0x96   :  { %167 = vpow2.f32 %v78_v8 }
  0x99   :  { %v89_v11 = vpop.permute.xlu0 %88 }
  0x9a   :  { %vm90_vm1 = vcmp.eq.s32.totalorder %v86_v10, %v89_v11 }
  0x9b   :  { %v91_v14 = vsel %vm90_vm1, %v77_v7, 0.0 }
  0x9c   :  { %v92_v15 = vsel %vm73_vm0, %v91_v14, 0.0 }
  0xa0   :  { %v168_v12 = vpop.eup %167 }
  0xa1   :  { %v80_v13 = vsel %vm73_vm0, %v168_v12, 0.0 }
  0xa2   :  { %81 = vadd.xlane.f32.xlu1 %v80_v13 }
  0xa6   :  { %93 = vadd.xlane.f32.xlu1 %v92_v15 }
 0x12f   :  { %v82_v16 = vpop.xlane.xlu1 %81 }
 0x130   :  { %169 = vlog2.f32 %v82_v16 }
 0x133   :  { %v94_v19 = vpop.xlane.xlu1 %93 }
 0x13a   :  { %v170_v17 = vpop.eup %169 }
 0x13b   :  { %v96_v18 = vmul.f32 0.6931472, %v170_v17 }
 0x13d   :  { %v97_v20 = vsub.f32 %v96_v18, %v94_v19 }
 0x13f   :  { %v98_v21 = vsub.f32 0.0, %v97_v20 }
 0x141   :  { %v99_v22 = vmul.f32 1.442695, %v98_v21 }
 0x143   :  { %171 = vpow2.f32 %v99_v22 }
 0x14d   :  { %v172_v23 = vpop.eup %171 }
 0x14e   :  { %v101_v24 = vsub.f32 1.0, %v172_v23 }
 0x150   :  { %v102_v25 = vmax.f32 %v101_v24, 0.0 }
 0x152   :  { %v103_v26 = vmul.f32 %v102_v25, %v102_v25 }
 0x154   :  { %v104_v27 = vmul.f32 %v103_v26, %v97_v20 }
 0x156   :  { %v115_v28 = vsel %vm114_vm2, %v104_v27, 0.0 }
 0x157   :  { %116 = vadd.xlane.f32.xlu1 %v115_v28 }
 0x1e4   :  { %v117_v29 = vpop.xlane.xlu1 %116 }
 0x1e5   :  { %v118_v30 = vrot.slane %v117_v29, 4 }
 0x1e7   :  { %v119_v31 = vadd.f32 %v118_v30, %v117_v29 }
 0x1e9   :  { %v120_v32 = vrot.slane %v119_v31, 2 }
 0x1eb   :  { %v121_v33 = vadd.f32 %v120_v32, %v119_v31 }
 0x1ed   :  { %v122_v34 = vrot.slane %v121_v33, 1 }
 0x1ef   :  { %v123_v35 = vadd.f32 %v122_v34, %v121_v33 }
 0x1f1   :  { %162 = vpush %v123_v35 }
 0x222   :  { %s163_s13 = spop %162 }
 0x223   :  { %v132_v36 = vstv %s163_s13 }
 0x224   :  { %133 = vst [vmem:[#allocation3] sm:$0xff] %v132_v36 }
 0x225   :  { %184 = shalt.err (!%p181_p4)
}
 0x226   :  { %s185_s17 = scalar_lea.hbm %s237_s2, 128 }
 0x227   :  { %p186_p5 = scmp.ne.s32.totalorder %s237_s2, %s185_s17  ;;  %p189_p6 = scmp.lt.u32.totalorder %s185_s17, %s237_s2 }
 0x229   :  { %p191_p7 = pnand %p189_p6, %p186_p5 }
 0x22b   :  { %194 = shalt.err (!%p191_p7)
}
 0x22c   :  { %143 = dma.vmem_to_hbm [thread:$0]  %s141_s1, 128, %s237_s2, [#allocation4]  }
 0x22d   :  { %195 = dma.done.wait [#allocation4], 128  }
 0x22e   :  { %196 = vsyncadd [#allocation4], 4294967168 }
 0x22f   :  { %147 = vsyncpa [#allocation4], 1 }

</bundles_post_ra>
